<compile_context>
chip_gen: v7x
topology: tpu7x:2x2x1
jax: 0.10.0
libtpu: 0.0.40
codegen_flags: <defaults>
</compile_context>

<pallas_src>
import functools

import jax
import jax.numpy as jnp
from jax.experimental import pallas as pl
from jax.experimental.pallas import tpu as pltpu

LN_EPS = 1e-5  # nn.LayerNorm default


def _round_up(x, n):
    return ((x + n - 1) // n) * n


def _pwff_kernel(x_ref, w1_ref, p_ref, w2_ref, b2_ref, o_ref):
    """Fused Linear -> (dropout=identity) -> LayerNorm -> ReLU -> Linear for one row tile.

    Matmul operands stay in their native dtype (bf16-friendly) with f32
    accumulation; LayerNorm statistics and the gamma/beta affine run in f32.
    """
    # ff1.fc: (tile_m, d_model) @ (d_model, d_ff), f32 accumulation.
    h = jnp.dot(x_ref[...], w1_ref[...], preferred_element_type=jnp.float32)
    h = h + p_ref[0:1, :]  # b1 (f32)

    # TODO(synk): dropout layers are identity here (inference/eval semantics).

    # ff1.layer_norm over d_ff — single-pass moments in f32.
    mean = jnp.mean(h, axis=-1, keepdims=True)
    mean_sq = jnp.mean(h * h, axis=-1, keepdims=True)
    var = jnp.maximum(mean_sq - mean * mean, 0.0)
    h = (h - mean) * jax.lax.rsqrt(var + LN_EPS)
    h = h * p_ref[1:2, :] + p_ref[2:3, :]  # gamma, beta (f32)

    # ff1.activation: ReLU; cast down to the weight dtype for the second MXU pass.
    h_act = jnp.maximum(h, 0.0).astype(w2_ref.dtype)

    # ff2: (tile_m, d_ff) @ (d_ff, d_model), f32 accumulation.
    out = jnp.dot(h_act, w2_ref[...], preferred_element_type=jnp.float32)
    out = out + b2_ref[...]
    o_ref[...] = out.astype(o_ref.dtype)


@functools.partial(jax.jit, static_argnames=("tile_m",))
def positionwise_ff(x, w1, b1, gamma, beta, w2, b2, *, tile_m=256):
    """x: (batch, seq, d_model) -> (batch, seq, d_model).

    Weights are stored as (in, out) so the kernel computes plain x @ W with the
    feature axis last (TPU lane axis). d_model / d_ff should be multiples of 128
    for full-rate stores on real shapes; small full-array dims also work.
    """
    batch, seq, d_model = x.shape
    d_ff = w1.shape[1]
    m = batch * seq

    # MXU-friendly row tile: large by default, clamped for small inputs,
    # always a multiple of 16 sublanes (valid for both f32 and bf16 tiles).
    tile_m = max(16, min(tile_m, _round_up(m, 16)))
    tile_m = _round_up(tile_m, 16)
    padded_m = _round_up(m, tile_m)

    x2d = x.reshape(m, d_model)
    if padded_m != m:
        x2d = jnp.pad(x2d, ((0, padded_m - m), (0, 0)))

    # Pack the small per-feature vectors: one (3, d_ff) slab + one (1, d_model),
    # kept in f32 (LayerNorm affine / bias adds happen in f32).
    p = jnp.stack([b1, gamma, beta], axis=0).astype(jnp.float32)
    b2_2d = b2.reshape(1, d_model).astype(jnp.float32)

    grid = (padded_m // tile_m,)

    flops = 4 * padded_m * d_model * d_ff  # two matmuls, 2*M*K*N each
    bytes_accessed = (
        x2d.size * x2d.dtype.itemsize
        + padded_m * d_model * x.dtype.itemsize      # output
        + w1.size * w1.dtype.itemsize
        + w2.size * w2.dtype.itemsize
        + p.size * 4
        + b2_2d.size * 4
    )

    # Parameter blocks have a constant index_map -> never re-fetched, so don't
    # pay for a second (double) buffer in VMEM.
    const_buf = dict(pipeline_mode=pl.Buffered(1))

    out2d = pl.pallas_call(
        _pwff_kernel,
        out_shape=jax.ShapeDtypeStruct((padded_m, d_model), x.dtype),
        grid_spec=pltpu.PrefetchScalarGridSpec(
            num_scalar_prefetch=0,
            grid=grid,
            in_specs=[
                # x tile: rows vary with grid step, full feature dim (lane axis).
                pl.BlockSpec((tile_m, d_model), lambda i: (i, 0)),
                # parameters: full arrays, same block every step, single-buffered.
                pl.BlockSpec((d_model, d_ff), lambda i: (0, 0), **const_buf),
                pl.BlockSpec((3, d_ff), lambda i: (0, 0), **const_buf),
                pl.BlockSpec((d_ff, d_model), lambda i: (0, 0), **const_buf),
                pl.BlockSpec((1, d_model), lambda i: (0, 0), **const_buf),
            ],
            out_specs=pl.BlockSpec((tile_m, d_model), lambda i: (i, 0)),
        ),
        compiler_params=pltpu.CompilerParams(
            dimension_semantics=("parallel",),
            vmem_limit_bytes=64 << 20,
        ),
        cost_estimate=pl.CostEstimate(
            flops=flops,
            transcendentals=padded_m,  # one rsqrt per row
            bytes_accessed=bytes_accessed,
        ),
    )(x2d, w1, p, w2, b2_2d)

    return out2d[:m].reshape(batch, seq, d_model)


def _reference(x, w1, b1, gamma, beta, w2, b2):
    """Plain-JAX reference for correctness check (f32)."""
    h = jnp.einsum("bsd,df->bsf", x, w1) + b1
    mean = jnp.mean(h, axis=-1, keepdims=True)
    var = jnp.mean((h - mean) ** 2, axis=-1, keepdims=True)
    h = (h - mean) / jnp.sqrt(var + LN_EPS)
    h = h * gamma + beta
    h = jnp.maximum(h, 0.0)
    return jnp.einsum("bsf,fd->bsd", h, w2) + b2


if __name__ == "__main__":
    d_model, d_ff = 32, 64
    batch, seq = 2, 8

    key = jax.random.PRNGKey(0)
    k_x, k_w1, k_b1, k_g, k_beta, k_w2, k_b2 = jax.random.split(key, 7)

    x = jax.random.normal(k_x, (batch, seq, d_model), dtype=jnp.float32)

    # Deterministic "Linear"-style init; weights stored as (in, out).
    w1 = jax.random.normal(k_w1, (d_model, d_ff), dtype=jnp.float32) * (1.0 / d_model**0.5)
    b1 = jax.random.normal(k_b1, (d_ff,), dtype=jnp.float32) * 0.01
    gamma = 1.0 + 0.1 * jax.random.normal(k_g, (d_ff,), dtype=jnp.float32)
    beta = 0.05 * jax.random.normal(k_beta, (d_ff,), dtype=jnp.float32)
    w2 = jax.random.normal(k_w2, (d_ff, d_model), dtype=jnp.float32) * (1.0 / d_ff**0.5)
    b2 = jax.random.normal(k_b2, (d_model,), dtype=jnp.float32) * 0.01

    ref = _reference(x, w1, b1, gamma, beta, w2, b2)

    # f32 path: must match the reference tightly.
    out = jax.block_until_ready(positionwise_ff(x, w1, b1, gamma, beta, w2, b2))
    assert out.shape == (batch, seq, d_model)
    assert jnp.allclose(out, ref, atol=1e-4, rtol=1e-4), "f32 mismatch vs reference"

    # bf16 operands (fast MXU path): f32 accumulation + f32 LayerNorm inside the kernel.
    out_bf16 = jax.block_until_ready(
        positionwise_ff(
            x.astype(jnp.bfloat16),
            w1.astype(jnp.bfloat16), b1, gamma, beta,
            w2.astype(jnp.bfloat16), b2,
        )
    )
    assert out_bf16.dtype == jnp.bfloat16
    assert jnp.allclose(out_bf16.astype(jnp.float32), ref, atol=5e-2, rtol=5e-2), \
        "bf16 mismatch vs reference"

    print("KERNEL_OK")
</pallas_src>

<mosaic_0001>
module attributes {stable_mosaic.version = 11 : i64} {
  func.func @_pwff_kernel(%arg0: i32, %arg1: memref<16x32xf32, #tpu.memory_space<vmem>>, %arg2: memref<32x64xf32, #tpu.memory_space<vmem>>, %arg3: memref<3x64xf32, #tpu.memory_space<vmem>>, %arg4: memref<64x32xf32, #tpu.memory_space<vmem>>, %arg5: memref<1x32xf32, #tpu.memory_space<vmem>>, %arg6: memref<16x32xf32, #tpu.memory_space<vmem>>) attributes {dimension_semantics = [#tpu.dimension_semantics<parallel>], iteration_bounds = array<i64: 1>, scalar_prefetch = 0 : i64, scratch_operands = 0 : i64, tpu.core_type = #tpu.core_type<tc>, window_params = [{transform_indices = @transform_0, window_bounds = array<i64: 16, 32>}, {pipeline_mode = #tpu.pipeline_mode<synchronous>, transform_indices = @transform_1, window_bounds = array<i64: 32, 64>}, {pipeline_mode = #tpu.pipeline_mode<synchronous>, transform_indices = @transform_2, window_bounds = array<i64: 3, 64>}, {pipeline_mode = #tpu.pipeline_mode<synchronous>, transform_indices = @transform_3, window_bounds = array<i64: 64, 32>}, {pipeline_mode = #tpu.pipeline_mode<synchronous>, transform_indices = @transform_4, window_bounds = array<i64: 1, 32>}, {transform_indices = @transform_5, window_bounds = array<i64: 16, 32>}]} {
    %c0 = arith.constant 0 : index
    %c0_0 = arith.constant 0 : index
    %0 = vector.load %arg1[%c0, %c0_0] : memref<16x32xf32, #tpu.memory_space<vmem>>, vector<16x32xf32>
    %c0_1 = arith.constant 0 : index
    %c0_2 = arith.constant 0 : index
    %1 = vector.load %arg2[%c0_1, %c0_2] : memref<32x64xf32, #tpu.memory_space<vmem>>, vector<32x64xf32>
    %cst = arith.constant dense<0.000000e+00> : vector<16x64xf32>
    %2 = tpu.matmul %0, %1, %cst {dimension_numbers = #tpu.dot_dimension_numbers<[1], [0], [0], [1], [0, 0, 1, 1], [], []>} : vector<16x32xf32>, vector<32x64xf32>, vector<16x64xf32> -> vector<16x64xf32>
    %c0_3 = arith.constant 0 : index
    %c0_4 = arith.constant 0 : index
    %3 = vector.load %arg3[%c0_3, %c0_4] : memref<3x64xf32, #tpu.memory_space<vmem>>, vector<1x64xf32>
    %4 = vector.broadcast %3 : vector<1x64xf32> to vector<16x64xf32>
    %5 = arith.addf %2, %4 : vector<16x64xf32>
    %cst_5 = arith.constant dense<0.000000e+00> : vector<16xf32>
    %6 = vector.multi_reduction <add>, %5, %cst_5 [1] : vector<16x64xf32> to vector<16xf32>
    %7 = vector.shape_cast %6 : vector<16xf32> to vector<16x1xf32>
    %cst_6 = arith.constant 6.400000e+01 : f32
    %8 = vector.broadcast %cst_6 : f32 to vector<16x1xf32>
    %9 = arith.divf %7, %8 : vector<16x1xf32>
    %10 = arith.mulf %5, %5 : vector<16x64xf32>
    %cst_7 = arith.constant dense<0.000000e+00> : vector<16xf32>
    %11 = vector.multi_reduction <add>, %10, %cst_7 [1] : vector<16x64xf32> to vector<16xf32>
    %12 = vector.shape_cast %11 : vector<16xf32> to vector<16x1xf32>
    %cst_8 = arith.constant 6.400000e+01 : f32
    %13 = vector.broadcast %cst_8 : f32 to vector<16x1xf32>
    %14 = arith.divf %12, %13 : vector<16x1xf32>
    %15 = arith.mulf %9, %9 : vector<16x1xf32>
    %16 = arith.subf %14, %15 : vector<16x1xf32>
    %cst_9 = arith.constant 0.000000e+00 : f32
    %17 = vector.broadcast %cst_9 : f32 to vector<16x1xf32>
    %18 = arith.maximumf %16, %17 : vector<16x1xf32>
    %19 = vector.broadcast %9 : vector<16x1xf32> to vector<16x64xf32>
    %20 = arith.subf %5, %19 : vector<16x64xf32>
    %cst_10 = arith.constant 9.99999974E-6 : f32
    %21 = vector.broadcast %cst_10 : f32 to vector<16x1xf32>
    %22 = arith.addf %18, %21 : vector<16x1xf32>
    %23 = math.rsqrt %22 : vector<16x1xf32>
    %24 = vector.broadcast %23 : vector<16x1xf32> to vector<16x64xf32>
    %25 = arith.mulf %20, %24 : vector<16x64xf32>
    %c1 = arith.constant 1 : index
    %c0_11 = arith.constant 0 : index
    %26 = vector.load %arg3[%c1, %c0_11] : memref<3x64xf32, #tpu.memory_space<vmem>>, vector<1x64xf32>
    %27 = vector.broadcast %26 : vector<1x64xf32> to vector<16x64xf32>
    %28 = arith.mulf %25, %27 : vector<16x64xf32>
    %c2 = arith.constant 2 : index
    %c0_12 = arith.constant 0 : index
    %29 = vector.load %arg3[%c2, %c0_12] : memref<3x64xf32, #tpu.memory_space<vmem>>, vector<1x64xf32>
    %30 = vector.broadcast %29 : vector<1x64xf32> to vector<16x64xf32>
    %31 = arith.addf %28, %30 : vector<16x64xf32>
    %cst_13 = arith.constant 0.000000e+00 : f32
    %32 = vector.broadcast %cst_13 : f32 to vector<16x64xf32>
    %33 = arith.maximumf %31, %32 : vector<16x64xf32>
    %c0_14 = arith.constant 0 : index
    %c0_15 = arith.constant 0 : index
    %34 = vector.load %arg4[%c0_14, %c0_15] : memref<64x32xf32, #tpu.memory_space<vmem>>, vector<64x32xf32>
    %cst_16 = arith.constant dense<0.000000e+00> : vector<16x32xf32>
    %35 = tpu.matmul %33, %34, %cst_16 {dimension_numbers = #tpu.dot_dimension_numbers<[1], [0], [0], [1], [0, 0, 1, 1], [], []>} : vector<16x64xf32>, vector<64x32xf32>, vector<16x32xf32> -> vector<16x32xf32>
    %c0_17 = arith.constant 0 : index
    %c0_18 = arith.constant 0 : index
    %36 = vector.load %arg5[%c0_17, %c0_18] : memref<1x32xf32, #tpu.memory_space<vmem>>, vector<1x32xf32>
    %37 = vector.broadcast %36 : vector<1x32xf32> to vector<16x32xf32>
    %38 = arith.addf %35, %37 : vector<16x32xf32>
    %c0_19 = arith.constant 0 : index
    %c0_20 = arith.constant 0 : index
    %39 = vector.load %arg6[%c0_19, %c0_20] : memref<16x32xf32, #tpu.memory_space<vmem>>, vector<16x32xf32>
    tpu.vector_store %arg6[%c0_19, %c0_20], %38 {strides = array<i32>} : memref<16x32xf32, #tpu.memory_space<vmem>>, vector<16x32xf32>,
    return
  }
  func.func @transform_0(%arg0: i32) -> (i32, i32) {
    %c0_i32 = arith.constant 0 : i32
    %c0_i32_0 = arith.constant 0 : i32
    return %arg0, %c0_i32 : i32, i32
  }
  func.func @transform_1(%arg0: i32) -> (i32, i32) {
    %c0_i32 = arith.constant 0 : i32
    %c0_i32_0 = arith.constant 0 : i32
    %c0_i32_1 = arith.constant 0 : i32
    return %c0_i32, %c0_i32_0 : i32, i32
  }
  func.func @transform_2(%arg0: i32) -> (i32, i32) {
    %c0_i32 = arith.constant 0 : i32
    %c0_i32_0 = arith.constant 0 : i32
    %c0_i32_1 = arith.constant 0 : i32
    return %c0_i32, %c0_i32_0 : i32, i32
  }
  func.func @transform_3(%arg0: i32) -> (i32, i32) {
    %c0_i32 = arith.constant 0 : i32
    %c0_i32_0 = arith.constant 0 : i32
    %c0_i32_1 = arith.constant 0 : i32
    return %c0_i32, %c0_i32_0 : i32, i32
  }
  func.func @transform_4(%arg0: i32) -> (i32, i32) {
    %c0_i32 = arith.constant 0 : i32
    %c0_i32_0 = arith.constant 0 : i32
    %c0_i32_1 = arith.constant 0 : i32
    return %c0_i32, %c0_i32_0 : i32, i32
  }
  func.func @transform_5(%arg0: i32) -> (i32, i32) {
    %c0_i32 = arith.constant 0 : i32
    %c0_i32_0 = arith.constant 0 : i32
    return %arg0, %c0_i32 : i32, i32
  }
}

</mosaic_0001>

<bundles_post_ra>
// kernel: positionwise_ff.1
= control target key start
LH: loop header
LB: loop body
LE: loop exit
PB: predicated region body
PF: predicated region fallthrough
CT: control target
= control target key end

     0   :  { %10 = vsyncpa [#allocation3], 0  ;;  %s714_s0 = inlined_call_operand.hbm [shape: f32[16,32], index: 0, kind: input, shape index: {}]   ;;  %s715_s1 = inlined_call_operand.hbm [shape: f32[32,64], index: 1, kind: input, shape index: {}]   ;;  %s716_s2 = inlined_call_operand.hbm [shape: f32[3,64], index: 2, kind: input, shape index: {}]   ;;  %s717_s3 = inlined_call_operand.hbm [shape: f32[64,32], index: 3, kind: input, shape index: {}]   ;;  %s718_s4 = inlined_call_operand.hbm [shape: f32[1,32], index: 4, kind: input, shape index: {}]   ;;  %s719_s5 = inlined_call_operand.hbm [shape: f32[16,32], index: 5, kind: output, shape index: {}]  }
   0x1   :  { %11 = vsyncpa [#allocation6], 0 }
   0x2   :  { %12 = vsyncpa [#allocation9], 0 }
   0x3   :  { %13 = vsyncpa [#allocation4], 0  ;;  %s575_s18 = smov [#allocation5]   ;;  %s576_s20 = smov [#allocation8]  }
   0x4   :  { %s31_s19 = sshll.u32 %s575_s18, 4  ;;  %s53_s21 = sshll.u32 %s576_s20, 4  ;;  %s32_s19 = int_to_ptr.vmem [resolvable:$true] %s31_s19  ;;  %s613_s21 = int_to_ptr.vmem [resolvable:$true] %s53_s21 }
   0x5   :  { %s435_s24 = scalar_lea.hbm %s715_s1, 512 }
   0x6   :  { %p436_p0 = scmp.ne.s32.totalorder %s715_s1, %s435_s24  ;;  %p439_p1 = scmp.lt.u32.totalorder %s435_s24, %s715_s1 }
   0x8   :  { %p441_p2 = pnand %p439_p1, %p436_p0 }
   0xa   :  { %444 = shalt.err (!%p441_p2)
}
   0xb   :  { %s445_s29 = scalar_lea.vmem %s32_s19, 512  ;;  %p450_p4 = scmp.lt.s32.totalorder %s32_s19, %s32_s19 }
   0xc   :  { %p446_p3 = scmp.ne.s32.totalorder %s32_s19, %s445_s29  ;;  %p451_p5 = scmp.lt.s32.totalorder %s445_s29, %s445_s29 }
   0xe   :  { %p452_p6 = por %p451_p5, %p450_p4 }
  0x10   :  { %p453_p7 = pnand %p452_p6, %p446_p3 }
  0x12   :  { %456 = shalt.err (!%p453_p7)
}
  0x13   :  { %s577_s30 = smov 128   ;;  %s578_s6 = smov 8  }
  0x14   :  { %37 = dma.hbm_to_vmem [thread:$0]  %s715_s1, 512, %s32_s19, [#allocation6], %s577_s30, %s577_s30, %s578_s6  }
  0x15   :  { %s457_s11 = scalar_lea.hbm %s717_s3, 1024 }
  0x16   :  { %p458_p8 = scmp.ne.s32.totalorder %s717_s3, %s457_s11  ;;  %p461_p9 = scmp.lt.u32.totalorder %s457_s11, %s717_s3 }
  0x18   :  { %p463_p10 = pnand %p461_p9, %p458_p8 }
  0x1a   :  { %466 = shalt.err (!%p463_p10)
}
  0x1b   :  { %s467_s16 = scalar_lea.vmem %s613_s21, 1024  ;;  %p472_p12 = scmp.lt.s32.totalorder %s613_s21, %s613_s21 }
  0x1c   :  { %p468_p11 = scmp.ne.s32.totalorder %s613_s21, %s467_s16  ;;  %p473_p13 = scmp.lt.s32.totalorder %s467_s16, %s467_s16 }
  0x1e   :  { %p474_p0 = por %p473_p13, %p472_p12 }
  0x20   :  { %p475_p1 = pnand %p474_p0, %p468_p11 }
  0x22   :  { %478 = shalt.err (!%p475_p1)
}
  0x23   :  { %59 = dma.hbm_to_vmem [thread:$0]  %s717_s3, 1024, %s613_s21, [#allocation9], %s577_s30, %s577_s30, %s578_s6  }
  0x24   :  { %s579_s18 = smov [#allocation2]   ;;  %s580_s20 = smov [#allocation7]  }
  0x25   :  { %s19_s19 = sshll.u32 %s579_s18, 4  ;;  %s44_s22 = sshll.u32 %s580_s20, 4  ;;  %s20_s19 = int_to_ptr.vmem [resolvable:$true] %s19_s19  ;;  %s45_s22 = int_to_ptr.vmem [resolvable:$true] %s44_s22 }
  0x26   :  { %s479_s25 = scalar_lea.hbm %s714_s0, 256 }
  0x27   :  { %p480_p2 = scmp.ne.s32.totalorder %s714_s0, %s479_s25  ;;  %p483_p3 = scmp.lt.u32.totalorder %s479_s25, %s714_s0 }
  0x29   :  { %p485_p4 = pnand %p483_p3, %p480_p2 }
  0x2b   :  { %488 = shalt.err (!%p485_p4)
}
  0x2c   :  { %s489_s3 = scalar_lea.vmem %s20_s19, 256  ;;  %p494_p6 = scmp.lt.s32.totalorder %s20_s19, %s20_s19 }
  0x2d   :  { %p490_p5 = scmp.ne.s32.totalorder %s20_s19, %s489_s3  ;;  %p495_p7 = scmp.lt.s32.totalorder %s489_s3, %s489_s3 }
  0x2f   :  { %p496_p8 = por %p495_p7, %p494_p6 }
  0x31   :  { %p497_p9 = pnand %p496_p8, %p490_p5 }
  0x33   :  { %500 = shalt.err (!%p497_p9)
}
  0x34   :  { %25 = dma.hbm_to_vmem [thread:$0]  %s714_s0, 256, %s20_s19, [#allocation3], %s577_s30, %s577_s30, %s578_s6  }
  0x35   :  { %s501_s10 = scalar_lea.hbm %s716_s2, 64 }
  0x36   :  { %p502_p10 = scmp.ne.s32.totalorder %s716_s2, %s501_s10  ;;  %p505_p11 = scmp.lt.u32.totalorder %s501_s10, %s716_s2 }
  0x38   :  { %p507_p12 = pnand %p505_p11, %p502_p10 }
  0x3a   :  { %510 = shalt.err (!%p507_p12)
}
  0x3b   :  { %s511_s15 = scalar_lea.vmem %s45_s22, 64  ;;  %p516_p0 = scmp.lt.s32.totalorder %s45_s22, %s45_s22 }
  0x3c   :  { %p512_p13 = scmp.ne.s32.totalorder %s45_s22, %s511_s15  ;;  %p517_p1 = scmp.lt.s32.totalorder %s511_s15, %s511_s15 }
  0x3e   :  { %p518_p2 = por %p517_p1, %p516_p0 }
  0x40   :  { %p519_p3 = pnand %p518_p2, %p512_p13 }
  0x42   :  { %522 = shalt.err (!%p519_p3)
}
  0x43   :  { %47 = dma.hbm_to_vmem [thread:$0]  %s716_s2, 64, %s45_s22, [#allocation6]  }
  0x44   :  { %s581_s1 = smov [#allocation10]   ;;  %s523_s20 = scalar_lea.hbm %s718_s4, 16 }
  0x45   :  { %s66_s17 = sshll.u32 %s581_s1, 4  ;;  %p524_p4 = scmp.ne.s32.totalorder %s718_s4, %s523_s20  ;;  %s67_s17 = int_to_ptr.vmem [resolvable:$true] %s66_s17 }
  0x46   :  { %p527_p5 = scmp.lt.u32.totalorder %s523_s20, %s718_s4 }
  0x48   :  { %p529_p6 = pnand %p527_p5, %p524_p4 }
  0x4a   :  { %532 = shalt.err (!%p529_p6)
}
  0x4b   :  { %s533_s27 = scalar_lea.vmem %s67_s17, 16  ;;  %s537_s2 = scalar_lea.vmem %s67_s17, 32 }
  0x4c   :  { %p534_p7 = scmp.ne.s32.totalorder %s67_s17, %s533_s27  ;;  %p538_p8 = scmp.lt.s32.totalorder %s67_s17, %s67_s17 }
  0x4d   :  { %p539_p9 = scmp.lt.s32.totalorder %s537_s2, %s533_s27 }
  0x4f   :  { %p540_p10 = por %p539_p9, %p538_p8 }
  0x51   :  { %p541_p11 = pnand %p540_p10, %p534_p7 }
  0x53   :  { %544 = shalt.err (!%p541_p11)
}
  0x54   :  { %69 = dma.hbm_to_vmem [thread:$0]  %s718_s4, 16, %s67_s17, [#allocation9]  }
  0x55   :  { %567 = dma.done.wait [#allocation3], 256  }
  0x56   :  { %568 = vsyncadd [#allocation3], 4294967040 }
  0x57   :  { %569 = dma.done.wait [#allocation6], 576  }
  0x58   :  { %570 = vsyncadd [#allocation6], 4294966720 }
  0x59   :  { %571 = dma.done.wait [#allocation9], 1040  }
  0x5a   :  { %572 = vsyncadd [#allocation9], 4294966256  ;;  %vm96_vm0 = vcmask 261120   ;;  %v87_v0 = vld [vmem:[#allocation5] sm:$0xff]  ;;  %v88_v1 = vld [vmem:[#allocation5 + $0x8] sm:$0xff]  ;;  %vm178_vm1 = vcmask 523264  }
  0x5b   :  { %v89_v2 = vld [vmem:[#allocation5 + $0x10] sm:$0xff]  ;;  %v399_v3 = vpack.c.bf16 %v88_v1, %v87_v0  ;;  %v90_v4 = vld [vmem:[#allocation5 + $0x18] sm:$0xff]  ;;  %v345_v8 = vld [vmem:[#allocation7] ss:$0 sm:$0xff]  ;;  %s582_s4 = smov [#allocation11]  }
  0x5c   :  { %v85_v5 = vld [vmem:[#allocation2] sm:$0xff]  ;;  %v403_v6 = vpack.c.bf16 %v90_v4, %v89_v2  ;;  %v86_v7 = vld [vmem:[#allocation2 + $0x8] sm:$0xff]  ;;  %v228_v19 = vld [vmem:[#allocation8] sm:$0xff]  ;;  %s331_s29 = sshll.u32 %s582_s4, 4  ;;  %s332_s29 = int_to_ptr.vmem [resolvable:$true] %s331_s29 }
  0x5d   :  { %377 = vmatprep.mubr.msk.f32.mxu0 %vm96_vm0, %v85_v5  ;;  %400 = vmatprep.subr.bf16.mxu0 %v399_v3  ;;  %v229_v20 = vld [vmem:[#allocation8 + $0x8] sm:$0xff]  ;;  %v230_v21 = vld [vmem:[#allocation8 + $0x10] sm:$0xff]  ;;  %v231_v23 = vld [vmem:[#allocation8 + $0x18] sm:$0xff]  ;;  %s545_s3 = scalar_lea.vmem %s332_s29, 256  ;;  %p550_p13 = scmp.lt.s32.totalorder %s332_s29, %s332_s29 }
  0x5e   :  { %402 = vmatpush3.bf16.msra.mxu0 %v399_v3  ;;  %v407_v22 = vpack.c.bf16 %v229_v20, %v228_v19  ;;  %v411_v24 = vpack.c.bf16 %v231_v23, %v230_v21  ;;  %v232_v25 = vld [vmem:[#allocation8 + $0x20] sm:$0xff]  ;;  %v233_v26 = vld [vmem:[#allocation8 + $0x28] sm:$0xff]  ;;  %v234_v28 = vld [vmem:[#allocation8 + $0x30] sm:$0xff]  ;;  %p546_p12 = scmp.ne.s32.totalorder %s332_s29, %s545_s3  ;;  %p551_p0 = scmp.lt.s32.totalorder %s545_s3, %s545_s3 }
  0x5f   :  { %404 = vmatprep.subr.bf16.mxu0 %v403_v6  ;;  %v415_v27 = vpack.c.bf16 %v233_v26, %v232_v25  ;;  %v235_v29 = vld [vmem:[#allocation8 + $0x38] sm:$0xff]  ;;  %v350_v61 = vld [vmem:[#allocation10] ss:$0 sm:$0xff] }
  0x60   :  { %408 = vmatprep.subr.bf16.mxu1 %v407_v22  ;;  %v419_v30 = vpack.c.bf16 %v235_v29, %v234_v28  ;;  %v348_v49 = vld [vmem:[#allocation7 + $0x1] ss:$0 sm:$0xff]  ;;  %v349_v51 = vld [vmem:[#allocation7 + $0x2] ss:$0 sm:$0xff]  ;;  %p552_p1 = por %p551_p0, %p550_p13 }
  0x61   :  { %410 = vmatpush3.bf16.msra.mxu1 %v407_v22 }
  0x62   :  { %406 = vmatpush3.bf16.msra.mxu0 %v403_v6  ;;  %412 = vmatprep.subr.bf16.mxu1 %v411_v24  ;;  %p553_p2 = pnand %p552_p1, %p546_p12 }
  0x65   :  { %378 = vmatmul.mubr.msk.f32.vlgmr.msra.gmra.mrb[0].mxu0 %vm96_vm0, %v86_v7  ;;  %414 = vmatpush3.bf16.msra.mxu1 %v411_v24 }
  0x66   :  { %416 = vmatprep.subr.bf16.mxu1 %v415_v27 }
  0x69   :  { %418 = vmatpush3.bf16.msra.mxu1 %v415_v27 }
  0x6a   :  { %420 = vmatprep.subr.bf16.mxu1 %v419_v30 }
  0x6d   :  { %422 = vmatpush3.bf16.msra.mxu1 %v419_v30 }
 0x138   :  { %v379_v9 = vpop.f32.mrb[0].mxu0 }
 0x139   :  { %v169_v10 = vpop.f32.mrb[1].mxu0  ;;  %v175_v11 = vadd.f32 %v379_v9, %v345_v8 }
 0x13a   :  { %v170_v12 = vadd.f32 %v345_v8, %v169_v10 }
 0x13b   :  { %v189_v16 = vmul.f32 %v175_v11, %v175_v11  ;;  %v182_v17 = vsel %vm178_vm1, %v175_v11, 0.0 }
 0x13c   :  { %v179_v13 = vsel %vm178_vm1, %v170_v12, 0.0  ;;  %v188_v14 = vmul.f32 %v170_v12, %v170_v12 }
 0x13d   :  { %180 = vadd.xlane.f32.xlu0 %v179_v13  ;;  %v193_v18 = vsel %vm178_vm1, %v189_v16, 0.0 }
 0x13e   :  { %v190_v15 = vsel %vm178_vm1, %v188_v14, 0.0 }
 0x13f   :  { %191 = vadd.xlane.f32.xlu1 %v190_v15 }
 0x141   :  { %183 = vadd.xlane.f32.xlu0 %v182_v17 }
 0x143   :  { %194 = vadd.xlane.f32.xlu1 %v193_v18 }
 0x1ca   :  { %v181_v31 = vpop.xlane.xlu0 %180 }
 0x1cb   :  { %v186_v32 = vmul.f32 0.015625, %v181_v31 }
 0x1cc   :  { %v192_v33 = vpop.xlane.xlu1 %191 }
 0x1cd   :  { %v198_v34 = vmul.f32 %v186_v32, %v186_v32  ;;  %v196_v35 = vmul.f32 0.015625, %v192_v33  ;;  %v204_v47 = vsub.f32 %v170_v12, %v186_v32 }
 0x1ce   :  { %v184_v36 = vpop.xlane.xlu0 %183 }
 0x1cf   :  { %v200_v37 = vsub.f32 %v196_v35, %v198_v34  ;;  %v187_v38 = vmul.f32 0.015625, %v184_v36 }
 0x1d0   :  { %v195_v39 = vpop.xlane.xlu1 %194 }
 0x1d1   :  { %v202_v40 = vmax.f32 %v200_v37, 0.0  ;;  %v199_v41 = vmul.f32 %v187_v38, %v187_v38  ;;  %v197_v42 = vmul.f32 0.015625, %v195_v39  ;;  %v205_v52 = vsub.f32 %v175_v11, %v187_v38 }
 0x1d3   :  { %v206_v43 = vadd.f32 1e-05, %v202_v40  ;;  %v201_v44 = vsub.f32 %v197_v42, %v199_v41 }
 0x1d5   :  { %431 = vrsqrt.f32 %v206_v43  ;;  %v203_v45 = vmax.f32 %v201_v44, 0.0 }
 0x1d7   :  { %v207_v46 = vadd.f32 1e-05, %v203_v45 }
 0x1d9   :  { %433 = vrsqrt.f32 %v207_v46 }
 0x1df   :  { %v432_v48 = vpop.eup %431 }
 0x1e0   :  { %v210_v50 = vmul.f32 %v432_v48, %v204_v47 }
 0x1e2   :  { %v217_v53 = vmul.f32 %v348_v49, %v210_v50 }
 0x1e3   :  { %v434_v54 = vpop.eup %433 }
 0x1e4   :  { %v211_v55 = vmul.f32 %v434_v54, %v205_v52  ;;  %v224_v56 = vadd.f32 %v349_v51, %v217_v53 }
 0x1e6   :  { %v218_v57 = vmul.f32 %v348_v49, %v211_v55  ;;  %v226_v58 = vmax.f32 %v224_v56, 0.0 }
 0x1e8   :  { %v225_v59 = vadd.f32 %v349_v51, %v218_v57  ;;  %396 = vmatprep.mubr.msk.f32.mxu1 %vm178_vm1, %v226_v58 }
 0x1ea   :  { %v227_v60 = vmax.f32 %v225_v59, 0.0 }
 0x1ec   :  { %397 = vmatmul.mubr.msk.f32.vlgmr.msra.gmra.mrb[0].mxu1 %vm178_vm1, %v227_v60 }
 0x2bf   :  { %v398_v62 = vpop.f32.mrb[0].mxu1 }
 0x2c0   :  { %v321_v63 = vadd.f32 %v398_v62, %v350_v61  ;;  %v315_v0 = vpop.f32.mrb[1].mxu1 }
 0x2c1   :  { %v316_v1 = vadd.f32 %v350_v61, %v315_v0 }
 0x2c2   :  { %325 = vst.msk [vmem:[#allocation11 + $0x8] sm:$0xff] %vm96_vm0, %v321_v63 }
 0x2c3   :  { %324 = vst.msk [vmem:[#allocation11] sm:$0xff] %vm96_vm0, %v316_v1 }
 0x2c4   :  { %556 = shalt.err (!%p553_p2)
}
 0x2c5   :  { %s557_s8 = scalar_lea.hbm %s719_s5, 256 }
 0x2c6   :  { %p558_p3 = scmp.ne.s32.totalorder %s719_s5, %s557_s8  ;;  %p561_p4 = scmp.lt.u32.totalorder %s557_s8, %s719_s5 }
 0x2c8   :  { %p563_p5 = pnand %p561_p4, %p558_p3 }
 0x2ca   :  { %566 = shalt.err (!%p563_p5)
}
 0x2cb   :  { %337 = dma.vmem_to_hbm [thread:$0]  %s332_s29, 256, %s719_s5, [#allocation4], %s577_s30, %s577_s30, %s578_s6  }
 0x2cc   :  { %573 = dma.done.wait [#allocation4], 256  }
 0x2cd   :  { %574 = vsyncadd [#allocation4], 4294967040 }
 0x2ce   :  { %341 = vsyncpa [#allocation3], 1 }
 0x2cf   :  { %342 = vsyncpa [#allocation6], 1 }
 0x2d0   :  { %343 = vsyncpa [#allocation9], 1 }
 0x2d1   :  { %344 = vsyncpa [#allocation4], 1 }

</bundles_post_ra>
